<compile_context>
chip_gen: v6e
topology: v6e:2x2x1
jax: 0.10.0
libtpu: 0.0.40
codegen_flags: <defaults>
</compile_context>

<pallas_src>
import math

import jax
import jax.numpy as jnp
from jax.experimental import pallas as pl
from jax.experimental.pallas import tpu as pltpu


def _round_up(x: int, m: int) -> int:
    return ((x + m - 1) // m) * m


def _cdiv(a: int, b: int) -> int:
    return (a + b - 1) // b


def _split_kernel(t_ref, freq_ref, out_ref):
    # t_ref: (TB, 1) f32; freq_ref: (1, half) f32, grid-resident; out_ref: (TB, 2*half)
    half = freq_ref.shape[1]
    emb = t_ref[...] * freq_ref[...]                     # (TB, half) half-width vmul
    out_ref[:, :half] = jnp.sin(emb).astype(out_ref.dtype)
    out_ref[:, half:] = jnp.cos(emb).astype(out_ref.dtype)


def _phase_kernel(t_ref, fp_ref, out_ref):
    # t_ref: (TB, 1) or (TB, W) f32; fp_ref: (2, W) = [freqs ; phases], grid-resident.
    # sin(x + pi/2) == cos(x)  ->  single full-width mul/add + one lane-dense store.
    emb = t_ref[...] * fp_ref[0:1, :] + fp_ref[1:2, :]
    out_ref[...] = jnp.sin(emb).astype(out_ref.dtype)


def sinusoidal_pos_emb(t: jax.Array, dim: int, *, out_dtype=jnp.float32,
                       target_tile_bytes: int = 4 << 20) -> jax.Array:
    """Pallas implementation of SinusoidalPosEmb.forward.

    Args:
      t:   (B,) timesteps (any float/int dtype).
      dim: embedding dimension (even, >= 4).
      out_dtype: float32 matches the PyTorch module; bf16 is an opt-in (~2x
        fewer output bytes on the store-bound path).
      target_tile_bytes: approximate output-tile byte budget per grid step.

    Returns:
      (B, dim) array: concat([sin(t*freqs), cos(t*freqs)], axis=-1).
    """
    assert dim % 2 == 0 and dim >= 4, "dim must be even and >= 4"
    half = dim // 2
    B = int(t.shape[0])

    out_itemsize = jnp.dtype(out_dtype).itemsize
    sublane = 16 if out_itemsize < 4 else 8          # bf16 packs 2 rows / sublane

    t_f32 = t.astype(jnp.float32)

    # ---- Constants (hoisted; enter as tiny grid-resident inputs). ----
    scale = math.log(10000.0) / (half - 1)
    freqs = jnp.exp(jnp.arange(half, dtype=jnp.float32) * (-scale))      # (half,)

    if half % 128 == 0:
        # ---- Split path: exact sin/cos on half-width emb, two lane-dense stores.
        kernel = _split_kernel
        const_in = freqs.reshape(1, half)                                 # (1, half)
        rows, k, w_out = B, 1, dim
        t_in = t_f32.reshape(B, 1)
    else:
        # ---- Phase-trick path, optionally lane-folded for dim < 128.
        kernel = _phase_kernel
        k = 128 // dim if (dim < 128 and 128 % dim == 0) else 1
        w_out = k * dim
        freq_row = jnp.tile(jnp.concatenate([freqs, freqs]), k)           # (W,)
        phase_row = jnp.tile(
            jnp.concatenate([jnp.zeros((half,), jnp.float32),
                             jnp.full((half,), math.pi / 2.0, jnp.float32)]), k)
        const_in = jnp.stack([freq_row, phase_row])                       # (2, W)
        if k > 1:
            rows = _cdiv(B, k)
            b_fold = rows * k
            t_pad = jnp.pad(t_f32, (0, b_fold - B)) if b_fold != B else t_f32
            # Each original row occupies a dim-wide lane slot of one kernel row.
            t_in = jnp.repeat(t_pad.reshape(rows, k), dim, axis=1)        # (rows, W)
        else:
            rows = B
            t_in = t_f32.reshape(B, 1)

    # ---- Batch tiling: byte-budgeted, sublane-aligned, >= 2 grid steps when possible.
    row_bytes = w_out * out_itemsize
    tb_budget = max(sublane, (target_tile_bytes // row_bytes) // sublane * sublane)
    rows_al = _round_up(rows, sublane)
    tb_two = _round_up(_cdiv(rows_al, 2), sublane)   # split across v7x's 2 TCs
    TB = max(sublane, min(tb_budget, tb_two, rows_al))
    rows_pad = _round_up(rows, TB)
    if rows_pad != rows:
        t_in = jnp.pad(t_in, ((0, rows_pad - rows), (0, 0)))

    # ---- VMEM budget: double-buffered out + t tiles + resident constants. ----
    vmem_needed = 2 * (TB * w_out * out_itemsize + TB * t_in.shape[1] * 4
                       + int(const_in.size) * 4)
    vmem_limit = int(min(64 << 20, max(32 << 20, 2 * vmem_needed)))

    out = pl.pallas_call(
        kernel,
        out_shape=jax.ShapeDtypeStruct((rows_pad, w_out), out_dtype),
        grid=(rows_pad // TB,),
        in_specs=[
            pl.BlockSpec((TB, t_in.shape[1]), lambda i: (i, 0)),   # timesteps
            pl.BlockSpec(const_in.shape, lambda i: (0, 0)),        # constants, resident
        ],
        out_specs=pl.BlockSpec((TB, w_out), lambda i: (i, 0)),
        compiler_params=pltpu.CompilerParams(
            dimension_semantics=("parallel",),       # shard batch tiles across TCs
            vmem_limit_bytes=vmem_limit,
        ),
    )(t_in, const_in)

    if k > 1:
        return out[:rows].reshape(rows * k, dim)[:B]
    return out[:B] if rows_pad != B else out


def _reference(t: jax.Array, dim: int) -> jax.Array:
    half_dim = dim // 2
    emb = math.log(10000.0) / (half_dim - 1)
    freqs = jnp.exp(jnp.arange(half_dim, dtype=jnp.float32) * -emb)
    emb = t[:, None].astype(jnp.float32) * freqs[None, :]
    return jnp.concatenate([jnp.sin(emb), jnp.cos(emb)], axis=-1)


if __name__ == "__main__":
    key = jax.random.PRNGKey(0)

    # 1) Split path (half % 128 == 0): typical diffusion time-embedding width.
    B1, dim1 = 64, 256
    t1 = jax.random.uniform(key, (B1,), jnp.float32, minval=0.0, maxval=1000.0)
    out1 = jax.block_until_ready(sinusoidal_pos_emb(t1, dim1))
    ref1 = _reference(t1, dim1)
    assert out1.shape == (B1, dim1) and out1.dtype == jnp.float32
    assert jnp.allclose(out1, ref1, atol=2e-4, rtol=2e-4), "mismatch (split path)"

    # 2) Phase-trick path (half < 128, dim lane-dense), multi-step grid.
    B2, dim2 = 16, 128
    t2 = jax.random.uniform(jax.random.PRNGKey(1), (B2,), jnp.float32, 0.0, 1000.0)
    out2 = jax.block_until_ready(sinusoidal_pos_emb(t2, dim2))
    ref2 = _reference(t2, dim2)
    assert out2.shape == (B2, dim2)
    assert jnp.allclose(out2, ref2, atol=2e-4, rtol=2e-4), "mismatch (phase path)"

    # 3) Lane-folded path (dim < 128): k = 128//dim rows packed per kernel row.
    B3, dim3 = 20, 32
    t3 = jax.random.uniform(jax.random.PRNGKey(2), (B3,), jnp.float32, 0.0, 1000.0)
    out3 = jax.block_until_ready(sinusoidal_pos_emb(t3, dim3))
    ref3 = _reference(t3, dim3)
    assert out3.shape == (B3, dim3)
    assert jnp.allclose(out3, ref3, atol=2e-4, rtol=2e-4), "mismatch (folded path)"

    print("KERNEL_OK")
</pallas_src>

<mosaic_0001>
module attributes {stable_mosaic.version = 11 : i64} {
  func.func @_split_kernel(%arg0: i32, %arg1: memref<32x1xf32, #tpu.memory_space<vmem>>, %arg2: memref<1x128xf32, #tpu.memory_space<vmem>>, %arg3: memref<32x256xf32, #tpu.memory_space<vmem>>) attributes {dimension_semantics = [#tpu.dimension_semantics<parallel>], iteration_bounds = array<i64: 2>, scalar_prefetch = 0 : i64, scratch_operands = 0 : i64, tpu.core_type = #tpu.core_type<tc>, window_params = [{transform_indices = @transform_0, window_bounds = array<i64: 32, 1>}, {pipeline_mode = #tpu.pipeline_mode<synchronous>, transform_indices = @transform_1, window_bounds = array<i64: 1, 128>}, {transform_indices = @transform_2, window_bounds = array<i64: 32, 256>}]} {
    %c0 = arith.constant 0 : index
    %c0_0 = arith.constant 0 : index
    %0 = vector.load %arg1[%c0, %c0_0] : memref<32x1xf32, #tpu.memory_space<vmem>>, vector<32x1xf32>
    %c0_1 = arith.constant 0 : index
    %c0_2 = arith.constant 0 : index
    %1 = vector.load %arg2[%c0_1, %c0_2] : memref<1x128xf32, #tpu.memory_space<vmem>>, vector<1x128xf32>
    %2 = vector.broadcast %0 : vector<32x1xf32> to vector<32x128xf32>
    %3 = vector.broadcast %1 : vector<1x128xf32> to vector<32x128xf32>
    %4 = arith.mulf %2, %3 : vector<32x128xf32>
    %5 = math.sin %4 : vector<32x128xf32>
    %c0_3 = arith.constant 0 : index
    %c0_4 = arith.constant 0 : index
    %6 = vector.load %arg3[%c0_3, %c0_4] : memref<32x256xf32, #tpu.memory_space<vmem>>, vector<32x128xf32>
    tpu.vector_store %arg3[%c0_3, %c0_4], %5 {strides = array<i32>} : memref<32x256xf32, #tpu.memory_space<vmem>>, vector<32x128xf32>,
    %7 = math.cos %4 : vector<32x128xf32>
    %c0_5 = arith.constant 0 : index
    %c128 = arith.constant 128 : index
    %8 = vector.load %arg3[%c0_5, %c128] : memref<32x256xf32, #tpu.memory_space<vmem>>, vector<32x128xf32>
    tpu.vector_store %arg3[%c0_5, %c128], %7 {strides = array<i32>} : memref<32x256xf32, #tpu.memory_space<vmem>>, vector<32x128xf32>,
    return
  }
  func.func @transform_0(%arg0: i32) -> (i32, i32) {
    %c0_i32 = arith.constant 0 : i32
    %c0_i32_0 = arith.constant 0 : i32
    return %arg0, %c0_i32 : i32, i32
  }
  func.func @transform_1(%arg0: i32) -> (i32, i32) {
    %c0_i32 = arith.constant 0 : i32
    %c0_i32_0 = arith.constant 0 : i32
    %c0_i32_1 = arith.constant 0 : i32
    return %c0_i32, %c0_i32_0 : i32, i32
  }
  func.func @transform_2(%arg0: i32) -> (i32, i32) {
    %c0_i32 = arith.constant 0 : i32
    %c0_i32_0 = arith.constant 0 : i32
    return %arg0, %c0_i32 : i32, i32
  }
}

</mosaic_0001>

<bundles_post_ra>
// kernel: tpu_custom_call.1
= control target key start
LH: loop header
LB: loop body
LE: loop exit
PB: predicated region body
PF: predicated region fallthrough
CT: control target
= control target key end

     0   :  { %7 = vsyncpa [#allocation3], 0  ;;  %s1753_s0 = inlined_call_operand.vmem [shape: f32[64,1], index: 0, kind: input, shape index: {}]   ;;  %s1754_s1 = inlined_call_operand.vmem [shape: f32[1,128], index: 1, kind: input, shape index: {}]   ;;  %s1755_s2 = inlined_call_operand.hbm [shape: f32[64,256], index: 2, kind: output, shape index: {}]  }
   0x1   :  { %9 = vsyncpa [#allocation3 + $0x1], 0  ;;  %s1310_s9 = smov 0   ;;  %s1312_s10 = smov 0  }
   0x2   :  { %s1314_s11 = smov 0   ;;  %s1316_s12 = smov 0  }
   0x3 LB: > { %s1331_s13 = sadd.s32 4294967295, %s1283_s12   ;;  %s1093_s14 = sadd.s32 4294967294, %s1283_s12   ;;  %s1283_s12 = sphi %s1316_s12, %s1765_s12   ;;  %s1279_s11 = sphi %s1314_s11, %s1764_s11   ;;  %s1275_s10 = sphi %s1312_s10, %s1763_s10   ;;  %s1271_s9 = sphi %s1310_s9, %s1762_s9  }
   0x4   : > { %s1335_s15 = sadd.s32 1, %s1283_s12   ;;  %s69_s16 = sadd.s32 1, %s1279_s11 }
   0x5   : > { %s66_s17 = ssub.s32 %s1283_s12, %s1335_s15  ;;  %p79_p0 = scmp.ne.s32.totalorder %s1279_s11, %s1275_s10 }
   0x6   : > { %p67_p1 = scmp.eq.s32.totalorder %s66_s17, 0  ;;  %p80_p2 = scmp.eq.s32.totalorder %s1331_s13, 1 }
   0x7   : > { %p85_p3 = scmp.ne.s32.totalorder %s1275_s10, %s1271_s9  ;;  %p86_p4 = scmp.eq.s32.totalorder %s1093_s14, 1 }
   0x8   : > { %s1346_s18 = scalar_select %p67_p1, %s1279_s11, %s69_s16  }
   0x9   : > { %p1348_p5 = por %p80_p2, %p79_p0  ;;  %p1352_p6 = por %p86_p4, %p85_p3 }
   0xa   : > { %p1096_p7 = scmp.ge.s32.totalorder %s1283_s12, 1  ;;  %p116_p8 = scmp.lt.s32.totalorder %s1283_s12, 3 }
   0xc   : > { %p117_p9 = pnand %p1096_p7, %p116_p8 }
   0xd   : > { %s1098_s21 = sshll.u32 (!%p117_p9), %s1331_s13, 2  ;;  %s135_s28 = sand.u32 (!%p117_p9), 1, %s1275_s10  }
   0xe   : > { %120 = sbr.rel (%p117_p9) target bundleno = 305 (0x131), region = 28  ;;  %p139_p10 = scmp.lt.s32.totalorder (!%p117_p9), %s1098_s21, 7 }
   0xf   : > { %s1097_s29 = sshll.u32 (!%p117_p9), %s135_s28, 6  ;;  %s1140_s3 = sshll.u32 (!%p117_p9), %s1331_s13, 10 }
  0x10   : > { %s1657_s30 = scalar_lea.vmem (!%p117_p9), [#allocation2], %s1097_s29  ;;  %s1704_s7 = scalar_lea.hbm (!%p117_p9), %s1755_s2, %s1140_s3 }
  0x11   : > { %s1031_s4 = sshll.u32 (!%p117_p9), %s1657_s30, 4  ;;  %s1713_s8 = scalar_lea.sflag (!%p117_p9), [#allocation3], %s135_s28  ;;  %s1706_s4 = int_to_ptr.vmem [resolvable:$true] %s1031_s4 }
  0x12   : > { %s1223_s13 = scalar_lea.vmem (!%p117_p9), %s1706_s4, 1024  ;;  %s1292_s14 = smov (!%p117_p9), [#allocation2]  }
  0x13   : > { %v1285_v0 = vmov 0   ;;  %s1767_s21 = smov (!%p139_p10, %s1098_s21), 7  ;;  %v1365_v5 = vld [vmem:[%s1754_s1] ss:$0 sm:$0xff]  ;;  %v1286_v38 = vmov 683565275   ;;  %p1224_p11 = scmp.ne.s32.totalorder %s1706_s4, %s1223_s13 }
  0x14   : > { %1206 = vset.pattern.permute.xlu1 %v1285_v0  ;;  %1205 = vset.pattern.permute.xlu0 %v1285_v0  ;;  %s1099_s22 = sshll.u32 %s1767_s21, 3  ;;  %v1287_v42 = vmov 2475754826   ;;  %v1288_v44 = vmov 2131351028   ;;  %s1227_s16 = sshll.u32 %s1292_s14, 4  ;;  %s1228_s16 = int_to_ptr.vmem [resolvable:$false] %s1227_s16 }
  0x15   : > { %s142_s25 = scalar_lea.vmem %s1753_s0, %s1099_s22  ;;  %v1289_v46 = vmov 2102212464   ;;  %v1290_v48 = vmov 920167782   ;;  %v1291_v55 = vmov 1326507024   ;;  %p1225_p12 = pnand %p1224_p11, %p1348_p5 }
  0x16   : > { %v147_v1 = vld [vmem:[%s142_s25 + $0x10] sm:$0xff]  ;;  %v145_v2 = vld [vmem:[%s142_s25] sm:$0xff]  ;;  %v148_v3 = vld [vmem:[%s142_s25 + $0x18] sm:$0xff]  ;;  %s1229_s17 = scalar_lea.vmem %s1228_s16, 2048  ;;  %p1230_p0 = scmp.lt.s32.totalorder %s1706_s4, %s1228_s16 }
  0x17   : > { %162 = vperm.xlu1 %1206, %v147_v1   ;;  %152 = vperm.xlu0 %1205, %v145_v2   ;;  %v146_v4 = vld [vmem:[%s142_s25 + $0x8] sm:$0xff]  ;;  %p1226_p13 = pneg %p1225_p12  ;;  %p1231_p1 = scmp.lt.s32.totalorder %s1229_s17, %s1223_s13 }
  0x19   : > { %p1232_p2 = por %p1231_p1, %p1230_p0 }
  0x1b   : > { %167 = vperm.xlu1 %1206, %v148_v3   ;;  %157 = vperm.xlu0 %1205, %v146_v4   ;;  %p1233_p3 = pnand %p1232_p2, %p1226_p13 }
  0x92   : > { %v163_v6 = vpop.permute.xlu1 %162  ;;  %v153_v7 = vpop.permute.xlu0 %152 }
  0x93   : > { %v1368_v8 = vmul.f32 %v1365_v5, %v163_v6  ;;  %v1371_v9 = vmul.f32 %v1365_v5, %v153_v7 }
  0x95   : > { %v388_v10 = vand.u32 2147483647, %v1368_v8  ;;  %v391_v11 = vand.u32 2139095040, %v1368_v8  ;;  %v180_v12 = vand.u32 2147483647, %v1371_v9  ;;  %v183_v13 = vand.u32 2139095040, %v1371_v9 }
  0x96   : > { %v168_v14 = vpop.permute.xlu1 %167  ;;  %vm390_vm14 = vcmp.lt.s32.totalorder %v1368_v8, 0 }
  0x97   : > { %v392_v15 = vshrl.u32 %v391_v11, 23  ;;  %v1378_v16 = vmul.f32 %v1365_v5, %v168_v14  ;;  %v395_v17 = vand.u32 8388607, %v388_v10  ;;  %v184_v18 = vshrl.u32 %v183_v13, 23 }
  0x98   : > { %v187_v19 = vand.u32 8388607, %v180_v12  ;;  %vm1468_vm13 = vcmp.le.f32.partialorder %v388_v10, 0.7853982 }
  0x99   : > { %v1109_v20 = vadd.s32 4294967169, %v392_v15  ;;  %v1101_v21 = vadd.s32 4294967169, %v184_v18  ;;  %v495_v22 = vand.u32 2139095040, %v1378_v16  ;;  %v396_v24 = vor.u32 8388608, %v395_v17 }
  0x9a   : > { %v188_v25 = vor.u32 8388608, %v187_v19  ;;  %v492_v36 = vand.u32 2147483647, %v1378_v16 }
  0x9b   : > { %v398_v23 = vadd.s32 1, %v1109_v20  ;;  %v190_v26 = vadd.s32 1, %v1101_v21  ;;  %v496_v27 = vshrl.u32 %v495_v22, 23  ;;  %v1385_v33 = vshll.u32 %v396_v24, 8 }
  0x9c   : > { %v1389_v35 = vshll.u32 %v188_v25, 8 }
  0x9d   : > { %vm399_vm0 = vcmp.gt.s32.totalorder %v398_v23, 0  ;;  %vm191_vm1 = vcmp.gt.s32.totalorder %v190_v26, 0  ;;  %v1113_v29 = vadd.s32 4294967169, %v496_v27 }
  0x9e   : > { %v400_v28 = vsel %vm399_vm0, %v398_v23, 0  ;;  %v192_v32 = vsel %vm191_vm1, %v190_v26, 0 }
  0x9f   : > { %v401_v30 = vshrl.u32 %v400_v28, 5  ;;  %v402_v31 = vand.u32 31, %v400_v28  ;;  %v1387_v34 = vshrl.u32 %v192_v32, 5  ;;  %v194_v40 = vand.u32 31, %v192_v32 }
  0xa0   : > { %v1393_v41 = vadd.s32 1, %v1113_v29 }
  0xa1   : > { %v403_v37 = vsub.s32 32, %v402_v31  ;;  %v405_v39 = vshll.u32 %v1286_v38, %v402_v31  ;;  %v408_v43 = vshll.u32 %v1287_v42, %v402_v31  ;;  %v411_v45 = vshll.u32 %v1288_v44, %v402_v31 }
  0xa2   : > { %v414_v47 = vshll.u32 %v1289_v46, %v402_v31  ;;  %v417_v49 = vshll.u32 %v1290_v48, %v402_v31  ;;  %vm420_vm2 = vcmp.lt.s32.totalorder %v401_v30, 1  ;;  %vm421_vm3 = vcmp.lt.s32.totalorder %v401_v30, 2 }
  0xa3   : > { %v406_v50 = vshrl.u32 %v1287_v42, %v403_v37  ;;  %v409_v51 = vshrl.u32 %v1288_v44, %v403_v37  ;;  %v412_v52 = vshrl.u32 %v1289_v46, %v403_v37  ;;  %v404_v53 = vshrl.u32 %v1286_v38, %v403_v37 }
  0xa4   : > { %v415_v54 = vshrl.u32 %v1290_v48, %v403_v37  ;;  %v418_v56 = vshrl.u32 %v1291_v55, %v403_v37  ;;  %v195_v60 = vsub.s32 32, %v194_v40  ;;  %vm422_vm4 = vcmp.lt.s32.totalorder %v401_v30, 3 }
  0xa5   : > { %v407_v57 = vor.u32 %v406_v50, %v405_v39  ;;  %v410_v58 = vor.u32 %v409_v51, %v408_v43  ;;  %v413_v59 = vor.u32 %v412_v52, %v411_v45  ;;  %vm423_vm5 = vcmp.lt.s32.totalorder %v401_v30, 4 }
  0xa6   : > { %v416_v61 = vor.u32 %v415_v54, %v414_v47  ;;  %v419_v62 = vor.u32 %v418_v56, %v417_v49  ;;  %v197_v7 = vshll.u32 %v1286_v38, %v194_v40  ;;  %v198_v14 = vshrl.u32 %v1287_v42, %v195_v60 }
  0xa7   : > { %v424_v63 = vsel %vm420_vm2, %v404_v53, %v407_v57  ;;  %v425_v0 = vsel %vm423_vm5, %v413_v59, 2102212464  ;;  %v428_v1 = vsel %vm420_vm2, %v407_v57, %v410_v58  ;;  %v432_v2 = vsel %vm420_vm2, %v410_v58, %v413_v59 }
  0xa8   : > { %v426_v3 = vsel %vm422_vm4, %v410_v58, %v425_v0  ;;  %v429_v4 = vsel %vm423_vm5, %v416_v61, 920167782  ;;  %v433_v6 = vsel %vm423_vm5, %v419_v62, 1326507024  ;;  %v200_v15 = vshll.u32 %v1287_v42, %v194_v40  ;;  %v158_v58 = vpop.permute.xlu0 %157 }
  0xa9   : > { %v430_v11 = vsel %vm422_vm4, %v413_v59, %v429_v4  ;;  %v434_v13 = vsel %vm422_vm4, %v416_v61, %v433_v6  ;;  %v427_v17 = vsel %vm421_vm3, %v424_v63, %v426_v3  ;;  %v201_v20 = vshrl.u32 %v1288_v44, %v195_v60 }
  0xaa   : > { %v431_v18 = vsel %vm421_vm3, %v428_v1, %v430_v11  ;;  %v435_v19 = vsel %vm421_vm3, %v432_v2, %v434_v13  ;;  %v199_v25 = vor.u32 %v198_v14, %v197_v7  ;;  %v203_v27 = vshll.u32 %v1288_v44, %v194_v40 }
  0xab   : > { %v1416_v21 = vmul.u32.u64.low %v1385_v33, %v435_v19  ;;  %v1417_v22 = vmul.u32.u64.high %v1385_v33, %v435_v19, %v1416_v21  ;;  %v1420_v23 = vmul.u32.u64.low %v1385_v33, %v431_v18  ;;  %v1421_v24 = vmul.u32.u64.high %v1385_v33, %v431_v18, %v1420_v23 }
  0xac   : > { %v202_v26 = vor.u32 %v201_v20, %v200_v15  ;;  %v204_v28 = vshrl.u32 %v1289_v46, %v195_v60  ;;  %v196_v29 = vshrl.u32 %v1286_v38, %v195_v60  ;;  %v206_v30 = vshll.u32 %v1289_v46, %v194_v40 }
  0xad   : > { %v207_v31 = vshrl.u32 %v1290_v48, %v195_v60  ;;  %v210_v32 = vshrl.u32 %v1291_v55, %v195_v60  ;;  %v443_v37 = vmul.u32 %v1385_v33, %v427_v17  ;;  %v209_v43 = vshll.u32 %v1290_v48, %v194_v40 }
  0xae   : > { %v205_v39 = vor.u32 %v204_v28, %v203_v27  ;;  %vm212_vm6 = vcmp.lt.s32.totalorder %v1387_v34, 1  ;;  %vm445_vm7 = vc.u32 %v1417_v22, %v1420_v23  ;;  %v446_v45 = vadd.s32 1, %v1421_v24 }
  0xaf   : > { %v208_v47 = vor.u32 %v207_v31, %v206_v30  ;;  %vm213_vm8 = vcmp.lt.s32.totalorder %v1387_v34, 2  ;;  %v211_v49 = vor.u32 %v210_v32, %v209_v43  ;;  %vm214_vm9 = vcmp.lt.s32.totalorder %v1387_v34, 3 }
  0xb0   : > { %vm215_vm10 = vcmp.lt.s32.totalorder %v1387_v34, 4  ;;  %v220_v50 = vsel %vm212_vm6, %v199_v25, %v202_v26  ;;  %v447_v33 = vsel %vm445_vm7, %v446_v45, %v1421_v24  ;;  %v224_v52 = vsel %vm212_vm6, %v202_v26, %v205_v39 }
  0xb1   : > { %v217_v51 = vsel %vm215_vm10, %v205_v39, 2102212464  ;;  %v221_v40 = vsel %vm215_vm10, %v208_v47, 920167782  ;;  %v448_v53 = vadd.s32 %v447_v33, %v443_v37  ;;  %v216_v54 = vsel %vm212_vm6, %v196_v29, %v199_v25 }
  0xb2   : > { %v222_v56 = vsel %vm214_vm9, %v205_v39, %v221_v40  ;;  %v225_v57 = vsel %vm215_vm10, %v211_v49, 1326507024  ;;  %v218_v59 = vsel %vm214_vm9, %v202_v26, %v217_v51  ;;  %vm503_vm11 = vcmp.gt.s32.totalorder %v1393_v41, 0 }
  0xb3   : > { %v223_v60 = vsel %vm213_vm8, %v220_v50, %v222_v56  ;;  %v226_v61 = vsel %vm214_vm9, %v208_v47, %v225_v57  ;;  %v449_v62 = vadd.s32 536870912, %v448_v53  ;;  %v1454_v4 = vmul.f32 %v1365_v5, %v158_v58 }
  0xb4   : > { %v227_v63 = vsel %vm213_vm8, %v224_v52, %v226_v61  ;;  %v1446_v0 = vmul.u32.u64.low %v1389_v35, %v223_v60  ;;  %v1447_v1 = vmul.u32.u64.high %v1389_v35, %v223_v60, %v1446_v0  ;;  %v219_v7 = vsel %vm213_vm8, %v216_v54, %v218_v59 }
  0xb5   : > { %v1450_v2 = vmul.u32.u64.low %v1389_v35, %v227_v63  ;;  %v1451_v3 = vmul.u32.u64.high %v1389_v35, %v227_v63, %v1450_v2  ;;  %v450_v6 = vshrl.u32 %v449_v62, 30  ;;  %v504_v11 = vsel %vm503_vm11, %v1393_v41, 0 }
  0xb6   : > { %v238_v14 = vadd.s32 1, %v1447_v1  ;;  %v499_v15 = vand.u32 8388607, %v492_v36  ;;  %v235_v17 = vmul.u32 %v1389_v35, %v219_v7  ;;  %v287_v18 = vand.u32 2139095040, %v1454_v4 }
  0xb7   : > { %v451_v13 = vshll.u32 %v450_v6, 30  ;;  %vm237_vm12 = vc.u32 %v1451_v3, %v1446_v0  ;;  %v506_v20 = vand.u32 31, %v504_v11  ;;  %v474_v41 = vsub.s32 4, %v450_v6 }
  0xb8   : > { %v239_v19 = vsel %vm237_vm12, %v238_v14, %v1447_v1  ;;  %v500_v24 = vor.u32 8388608, %v499_v15  ;;  %v288_v26 = vshrl.u32 %v287_v18, 23  ;;  %v284_v30 = vand.u32 2147483647, %v1454_v4 }
  0xb9   : > { %v452_v5 = vsub.s32 %v448_v53, %v451_v13  ;;  %v240_v34 = vadd.s32 %v239_v19, %v235_v17  ;;  %v507_v28 = vsub.s32 32, %v506_v20  ;;  %v444_v31 = vadd.s32 %v1420_v23, %v1417_v22 }
  0xba   : > { %v1478_v37 = vshrl.u32 %v504_v11, 5  ;;  %v1480_v39 = vshll.u32 %v500_v24, 8  ;;  %v475_v10 = vsel %vm390_vm14, %v474_v41, %v450_v6  ;;  %v1485_v43 = vadd.s32 %v1446_v0, %v1451_v3 }
  0xbb   : > { %v454_v21 = vsub.s32 0, %v452_v5  ;;  %v241_v25 = vadd.s32 536870912, %v240_v34  ;;  %v1105_v47 = vadd.s32 4294967169, %v288_v26  ;;  %v509_v50 = vshll.u32 %v1286_v38, %v506_v20 }
  0xbc   : > { %v510_v33 = vshrl.u32 %v1287_v42, %v507_v28  ;;  %v512_v22 = vshll.u32 %v1287_v42, %v506_v20  ;;  %v513_v51 = vshrl.u32 %v1288_v44, %v507_v28  ;;  %v516_v40 = vshrl.u32 %v1289_v46, %v507_v28 }
  0xbd   : > { %v1110_v27 = vmin.u32 %v454_v21, %v452_v5  ;;  %v1473_v29 = vshrl.u32 %v241_v25, 30  ;;  %v519_v52 = vshrl.u32 %v1290_v48, %v507_v28  ;;  %v1498_v53 = vsel %vm1468_vm13, 0, %v475_v10 }
  0xbe   : > { %v508_v54 = vshrl.u32 %v1286_v38, %v507_v28  ;;  %v522_v56 = vshrl.u32 %v1291_v55, %v507_v28  ;;  %v515_v59 = vshll.u32 %v1288_v44, %v506_v20  ;;  %v518_v60 = vshll.u32 %v1289_v46, %v506_v20 }
  0xbf   : > { %v456_v32 = vclz %v1110_v27  ;;  %v243_v45 = vshll.u32 %v1473_v29, 30  ;;  %v511_v63 = vor.u32 %v510_v33, %v509_v50  ;;  %v521_v0 = vshll.u32 %v1290_v48, %v506_v20 }
  0xc0   : > { %v514_v2 = vor.u32 %v513_v51, %v512_v22  ;;  %v517_v3 = vor.u32 %v516_v40, %v515_v59  ;;  %v520_v6 = vor.u32 %v519_v52, %v518_v60  ;;  %v266_v17 = vsub.s32 4, %v1473_v29 }
  0xc1   : > { %v1111_v49 = vadd.s32 4294967294, %v456_v32  ;;  %v1491_v23 = vsub.s32 %v240_v34, %v243_v45  ;;  %v523_v14 = vor.u32 %v522_v56, %v521_v0  ;;  %vm524_vm0 = vcmp.lt.s32.totalorder %v1478_v37, 1 }
  0xc2   : > { %vm525_vm1 = vcmp.lt.s32.totalorder %v1478_v37, 2  ;;  %vm526_vm2 = vcmp.lt.s32.totalorder %v1478_v37, 3  ;;  %vm527_vm3 = vcmp.lt.s32.totalorder %v1478_v37, 4  ;;  %v536_v21 = vsel %vm524_vm0, %v514_v2, %v517_v3 }
  0xc3   : > { %vm1112_vm15 = vcmp.lt.s32.totalorder %v1111_v49, 0  ;;  %v246_v58 = vsub.s32 0, %v1491_v23  ;;  %v533_v34 = vsel %vm527_vm3, %v520_v6, 920167782  ;;  %vm182_vm4 = vcmp.lt.s32.totalorder %v1371_v9, 0 }
  0xc4   : > { %v459_v57 = vsel %vm1112_vm15, 0, %v1111_v49  ;;  %v529_v41 = vsel %vm527_vm3, %v517_v3, 2102212464  ;;  %v534_v25 = vsel %vm526_vm2, %v517_v3, %v533_v34  ;;  %v537_v26 = vsel %vm527_vm3, %v523_v14, 1326507024 }
  0xc5   : > { %v460_v61 = vsub.s32 32, %v459_v57  ;;  %v464_v62 = vsub.s32 4294967266, %v459_v57  ;;  %v1102_v1 = vmin.u32 %v246_v58, %v1491_v23  ;;  %v461_v7 = vshll.u32 %v452_v5, %v459_v57 }
  0xc6   : > { %v532_v5 = vsel %vm524_vm0, %v511_v63, %v514_v2  ;;  %v528_v28 = vsel %vm524_vm0, %v508_v54, %v511_v63  ;;  %v530_v22 = vsel %vm526_vm2, %v514_v2, %v529_v41  ;;  %v294_v51 = vadd.s32 1, %v1105_v47 }
  0xc7   : > { %v462_v11 = vshrl.u32 %v444_v31, %v460_v61  ;;  %v465_v13 = vadd.s32 127, %v464_v62  ;;  %v248_v15 = vclz %v1102_v1  ;;  %v538_v31 = vsel %vm526_vm2, %v520_v6, %v537_v26 }
  0xc8   : > { %v535_v45 = vsel %vm525_vm1, %v532_v5, %v534_v25  ;;  %v539_v49 = vsel %vm525_vm1, %v536_v21, %v538_v31  ;;  %v481_v62 = vadd.s32 3, %v1498_v53  ;;  %vm1543_vm6 = vcmp.le.f32.partialorder %v180_v12, 0.7853982 }
  0xc9   : > { %v463_v18 = vor.u32 %v462_v11, %v461_v7  ;;  %v466_v19 = vshll.u32 %v465_v13, 23  ;;  %v1103_v20 = vadd.s32 4294967294, %v248_v15  ;;  %vm295_vm7 = vcmp.gt.s32.totalorder %v294_v51, 0 }
  0xca   : > { %v1531_v54 = vmul.u32.u64.low %v1480_v39, %v539_v49  ;;  %v1532_v56 = vmul.u32.u64.high %v1480_v39, %v539_v49, %v1531_v54  ;;  %v1536_v59 = vmul.u32.u64.low %v1480_v39, %v535_v45  ;;  %v1537_v60 = vmul.u32.u64.high %v1480_v39, %v535_v45, %v1536_v59 }
  0xcb   : > { %v467_v24 = vor.u32 4788187, %v466_v19  ;;  %v470_v27 = vcvt.s32.f32 %v463_v18  ;;  %vm1104_vm5 = vcmp.lt.s32.totalorder %v1103_v20, 0  ;;  %v296_v0 = vsel %vm295_vm7, %v294_v51, 0 }
  0xcc   : > { %v251_v10 = vsel %vm1104_vm5, 0, %v1103_v20  ;;  %v1552_v2 = vand.u32 3, %v1498_v53  ;;  %vm549_vm8 = vc.u32 %v1532_v56, %v1536_v59  ;;  %v291_v12 = vand.u32 8388607, %v284_v30 }
  0xcd   : > { %v468_v32 = vand.u32 2147483647, %v467_v24  ;;  %v252_v50 = vsub.s32 32, %v251_v10  ;;  %v256_v33 = vsub.s32 4294967266, %v251_v10  ;;  %v253_v52 = vshll.u32 %v1491_v23, %v251_v10 }
  0xce   : > { %v267_v37 = vsel %vm182_vm4, %v266_v17, %v1473_v29  ;;  %v550_v7 = vadd.s32 1, %v1537_v60  ;;  %v1565_v53 = vand.u32 3, %v481_v62  ;;  %v298_v13 = vand.u32 31, %v296_v0 }
  0xcf   : > { %v471_v40 = vmul.f32 %v470_v27, %v468_v32  ;;  %v254_v57 = vshrl.u32 %v1485_v43, %v252_v50  ;;  %v257_v58 = vadd.s32 127, %v256_v33  ;;  %v531_v43 = vsel %vm525_vm1, %v528_v28, %v530_v22 }
  0xd0   : > { %v547_v11 = vmul.u32 %v1480_v39, %v531_v43  ;;  %v551_v18 = vsel %vm549_vm8, %v550_v7, %v1537_v60  ;;  %v269_v35 = vsel %vm1543_vm6, 0, %v267_v37  ;;  %v1571_v20 = vshrl.u32 %v296_v0, 5 }
  0xd1   : > { %v472_v61 = vxor.u32 2147483648, %v471_v40  ;;  %v255_v23 = vor.u32 %v254_v57, %v253_v52  ;;  %v258_v63 = vshll.u32 %v257_v58, 23  ;;  %v299_v29 = vsub.s32 32, %v298_v13 }
  0xd2   : > { %v552_v19 = vadd.s32 %v551_v18, %v547_v11  ;;  %v301_v5 = vshll.u32 %v1286_v38, %v298_v13  ;;  %v304_v34 = vshll.u32 %v1287_v42, %v298_v13  ;;  %v307_v39 = vshll.u32 %v1288_v44, %v298_v13 }
  0xd3   : > { %v473_v1 = vsel %vm390_vm14, %v472_v61, %v471_v40  ;;  %v259_v6 = vor.u32 4788187, %v258_v63  ;;  %v262_v15 = vcvt.s32.f32 %v255_v23  ;;  %v302_v24 = vshrl.u32 %v1287_v42, %v299_v29 }
  0xd4   : > { %v476_v3 = vsel %vm1468_vm13, %v1368_v8, %v473_v1  ;;  %v553_v21 = vadd.s32 536870912, %v552_v19  ;;  %v305_v41 = vshrl.u32 %v1288_v44, %v299_v29  ;;  %v310_v25 = vshll.u32 %v1289_v46, %v298_v13 }
  0xd5   : > { %1207 = vcosq.f32 %v476_v3  ;;  %v260_v14 = vand.u32 2147483647, %v259_v6  ;;  %v308_v27 = vshrl.u32 %v1289_v46, %v299_v29  ;;  %v311_v28 = vshrl.u32 %v1290_v48, %v299_v29 }
  0xd6   : > { %1209 = vsinq.f32 %v476_v3  ;;  %v314_v31 = vshrl.u32 %v1291_v55, %v299_v29  ;;  %v1582_v32 = vshrl.u32 %v553_v21, 30  ;;  %v292_v10 = vor.u32 8388608, %v291_v12 }
  0xd7   : > { %v263_v17 = vmul.f32 %v262_v15, %v260_v14  ;;  %v303_v45 = vor.u32 %v302_v24, %v301_v5  ;;  %v306_v49 = vor.u32 %v305_v41, %v304_v34  ;;  %v309_v42 = vor.u32 %v308_v27, %v307_v39 }
  0xd8   : > { %v312_v33 = vor.u32 %v311_v28, %v310_v25  ;;  %v313_v44 = vshll.u32 %v1290_v48, %v298_v13  ;;  %vm901_vm9 = vcmp.eq.s32.totalorder %v1552_v2, 0  ;;  %v555_v55 = vshll.u32 %v1582_v32, 30 }
  0xd9   : > { %v264_v26 = vxor.u32 2147483648, %v263_v17  ;;  %vm316_vm10 = vcmp.lt.s32.totalorder %v1571_v20, 1  ;;  %vm319_vm11 = vcmp.lt.s32.totalorder %v1571_v20, 4  ;;  %vm900_vm12 = vcmp.lt.s32.totalorder %v1552_v2, 2 }
  0xda   : > { %v315_v22 = vor.u32 %v314_v31, %v313_v44  ;;  %v324_v48 = vsel %vm316_vm10, %v303_v45, %v306_v49  ;;  %v325_v51 = vsel %vm319_vm11, %v312_v33, 920167782  ;;  %vm480_vm13 = vweird.f32 %v1368_v8 }
  0xdb   : > { %v265_v50 = vsel %vm182_vm4, %v264_v26, %v263_v17  ;;  %vm904_vm14 = vcmp.eq.s32.totalorder %v1552_v2, 2  ;;  %v1601_v40 = vsub.s32 %v552_v19, %v555_v55  ;;  %vm318_vm15 = vcmp.lt.s32.totalorder %v1571_v20, 3 }
  0xdc   : > { %v268_v46 = vsel %vm1543_vm6, %v1371_v9, %v265_v50  ;;  %vm483_vm0 = vcmp.lt.s32.totalorder %v1565_v53, 2  ;;  %vm317_vm1 = vcmp.lt.s32.totalorder %v1571_v20, 2  ;;  %v326_v52 = vsel %vm318_vm15, %v309_v42, %v325_v51 }
  0xdd   : > { %1211 = vcosq.f32 %v268_v46  ;;  %v1609_v54 = vshll.u32 %v292_v10, 8  ;;  %vm484_vm2 = vcmp.eq.s32.totalorder %v1565_v53, 0  ;;  %v273_v57 = vadd.s32 3, %v269_v35 }
  0xde   : > { %1213 = vsinq.f32 %v268_v46  ;;  %v558_v58 = vsub.s32 0, %v1601_v40  ;;  %v327_v60 = vsel %vm317_vm1, %v324_v48, %v326_v52  ;;  %vm487_vm3 = vcmp.eq.s32.totalorder %v1565_v53, 2 }
  0xdf   : > { %v329_v62 = vsel %vm319_vm11, %v315_v22, 1326507024  ;;  %v1619_v47 = vmul.u32.u64.low %v1609_v54, %v327_v60  ;;  %v1620_v23 = vmul.u32.u64.high %v1609_v54, %v327_v60, %v1619_v47  ;;  %v693_v0 = vand.u32 3, %v269_v35 }
  0xe0   : > { %v1114_v1 = vmin.u32 %v558_v58, %v1601_v40  ;;  %v321_v12 = vsel %vm319_vm11, %v309_v42, 2102212464  ;;  %v300_v6 = vshrl.u32 %v1286_v38, %v299_v29  ;;  %v328_v37 = vsel %vm316_vm10, %v306_v49, %v309_v42 }
  0xe1   : > { %v330_v7 = vsel %vm318_vm15, %v312_v33, %v329_v62  ;;  %v274_v14 = vand.u32 3, %v273_v57  ;;  %v322_v19 = vsel %vm318_vm15, %v306_v49, %v321_v12  ;;  %vm694_vm4 = vcmp.lt.s32.totalorder %v693_v0, 2 }
  0xe2   : > { %v1208_v61 = vpop.eup %1207  ;;  %v560_v15 = vclz %v1114_v1  ;;  %v320_v38 = vsel %vm316_vm10, %v300_v6, %v303_v45  ;;  %v331_v34 = vsel %vm317_vm1, %v328_v37, %v330_v7  ;;  %v342_v53 = vadd.s32 1, %v1620_v23 }
  0xe3   : > { %v1210_v63 = vpop.eup %1209  ;;  %v488_v43 = vxor.u32 2147483648, %v1208_v61  ;;  %v1654_v24 = vmul.u32.u64.low %v1609_v54, %v331_v34  ;;  %v1655_v41 = vmul.u32.u64.high %v1609_v54, %v331_v34, %v1654_v24  ;;  %v323_v2 = vsel %vm317_vm1, %v320_v38, %v322_v19 }
  0xe4   : > { %v485_v3 = vxor.u32 2147483648, %v1210_v63  ;;  %v1115_v5 = vadd.s32 4294967294, %v560_v15  ;;  %vm275_vm6 = vcmp.lt.s32.totalorder %v274_v14, 2  ;;  %vm695_vm7 = vcmp.eq.s32.totalorder %v693_v0, 0 }
  0xe5   : > { %v489_v11 = vsel %vm487_vm3, %v488_v43, %v1210_v63  ;;  %v906_v13 = vsel %vm904_vm14, %v488_v43, %v1210_v63  ;;  %vm698_vm8 = vcmp.eq.s32.totalorder %v693_v0, 2  ;;  %v548_v26 = vadd.s32 %v1536_v59, %v1532_v56 }
  0xe6   : > { %v486_v18 = vsel %vm484_vm2, %v1208_v61, %v485_v3  ;;  %v903_v35 = vsel %vm901_vm9, %v1208_v61, %v485_v3  ;;  %vm1116_vm5 = vcmp.lt.s32.totalorder %v1115_v5, 0  ;;  %vm279_vm9 = vcmp.eq.s32.totalorder %v274_v14, 2 }
  0xe7   : > { %v490_v29 = vsel %vm483_vm0, %v486_v18, %v489_v11  ;;  %v907_v17 = vsel %vm900_vm12, %v903_v35, %v906_v13  ;;  %v563_v8 = vsel %vm1116_vm5, 0, %v1115_v5  ;;  %v339_v20 = vmul.u32 %v1609_v54, %v323_v2 }
  0xe8   : > { %v491_v39 = vsel %vm480_vm13, nan, %v490_v29  ;;  %v908_v21 = vsel %vm480_vm13, nan, %v907_v17  ;;  %v564_v27 = vsub.s32 32, %v563_v8  ;;  %v568_v28 = vsub.s32 4294967266, %v563_v8 }
  0xe9   : > { %598 = vst [vmem:[%s1657_s30 + $0x20] sm:$0xff] %v491_v39  ;;  %1014 = vst [vmem:[%s1657_s30 + $0x28] sm:$0xff] %v908_v21  ;;  %v565_v45 = vshll.u32 %v1601_v40, %v563_v8  ;;  %vm341_vm10 = vc.u32 %v1655_v41, %v1619_v47  ;;  %vm276_vm11 = vcmp.eq.s32.totalorder %v274_v14, 0  ;;  %vm272_vm12 = vweird.f32 %v1371_v9 }
  0xea   : > { %v1212_v25 = vpop.eup %1211  ;;  %v566_v50 = vshrl.u32 %v548_v26, %v564_v27  ;;  %v569_v42 = vadd.s32 127, %v568_v28  ;;  %v343_v33 = vsel %vm341_vm10, %v342_v53, %v1620_v23  ;;  %vm494_vm13 = vcmp.lt.s32.totalorder %v1378_v16, 0 }
  0xeb   : > { %v1214_v31 = vpop.eup %1213  ;;  %v280_v10 = vxor.u32 2147483648, %v1212_v25  ;;  %v344_v44 = vadd.s32 %v343_v33, %v339_v20  ;;  %v578_v9 = vsub.s32 4, %v1582_v32  ;;  %vm493_vm14 = vcmp.le.f32.partialorder %v492_v36, 0.7853982 }
  0xec   : > { %v277_v49 = vxor.u32 2147483648, %v1214_v31  ;;  %v567_v22 = vor.u32 %v566_v50, %v565_v45  ;;  %v570_v48 = vshll.u32 %v569_v42, 23  ;;  %v340_v18 = vadd.s32 %v1619_v47, %v1655_v41 }
  0xed   : > { %v281_v56 = vsel %vm279_vm9, %v280_v10, %v1214_v31  ;;  %v700_v59 = vsel %vm698_vm8, %v280_v10, %v1214_v31  ;;  %v345_v52 = vadd.s32 536870912, %v344_v44  ;;  %v579_v37 = vsel %vm494_vm13, %v578_v9, %v1582_v32 }
  0xee   : > { %v278_v46 = vsel %vm276_vm11, %v1212_v25, %v277_v49  ;;  %v697_v55 = vsel %vm695_vm7, %v1212_v25, %v277_v49  ;;  %v571_v58 = vor.u32 4788187, %v570_v48  ;;  %v574_v62 = vcvt.s32.f32 %v567_v22 }
  0xef   : > { %v282_v51 = vsel %vm275_vm6, %v278_v46, %v281_v56  ;;  %v701_v40 = vsel %vm694_vm4, %v697_v55, %v700_v59  ;;  %v1678_v60 = vshrl.u32 %v345_v52, 30  ;;  %v581_v13 = vsel %vm493_vm14, 0, %v579_v37 }
  0xf0   : > { %v283_v54 = vsel %vm272_vm12, nan, %v282_v51  ;;  %v702_v57 = vsel %vm272_vm12, nan, %v701_v40  ;;  %v572_v61 = vand.u32 2147483647, %v571_v58  ;;  %v585_v15 = vadd.s32 3, %v581_v13 }
  0xf1   : > { %596 = vst [vmem:[%s1657_s30] sm:$0xff] %v283_v54  ;;  %1012 = vst [vmem:[%s1657_s30 + $0x8] sm:$0xff] %v702_v57  ;;  %v347_v23 = vshll.u32 %v1678_v60, 30  ;;  %v1002_v17 = vand.u32 3, %v581_v13  ;;  %vm584_vm6 = vweird.f32 %v1378_v16  ;;  %vm286_vm7 = vcmp.lt.s32.totalorder %v1454_v4, 0 }
  0xf2   : > { %v575_v63 = vmul.f32 %v574_v62, %v572_v61  ;;  %v586_v5 = vand.u32 3, %v585_v15  ;;  %v370_v50 = vsub.s32 4, %v1678_v60  ;;  %vm285_vm8 = vcmp.le.f32.partialorder %v284_v30, 0.7853982 }
  0xf3   : > { %v348_v43 = vsub.s32 %v344_v44, %v347_v23  ;;  %vm1003_vm0 = vcmp.lt.s32.totalorder %v1002_v17, 2  ;;  %vm1007_vm1 = vcmp.eq.s32.totalorder %v1002_v17, 2  ;;  %vm1004_vm4 = vcmp.eq.s32.totalorder %v1002_v17, 0 }
  0xf4   : > { %v576_v1 = vxor.u32 2147483648, %v575_v63  ;;  %vm591_vm2 = vcmp.eq.s32.totalorder %v586_v5, 2  ;;  %vm588_vm3 = vcmp.eq.s32.totalorder %v586_v5, 0  ;;  %vm587_vm5 = vcmp.lt.s32.totalorder %v586_v5, 2 }
  0xf5   : > { %v350_v0 = vsub.s32 0, %v348_v43  ;;  %v371_v33 = vsel %vm286_vm7, %v370_v50, %v1678_v60 }
  0xf6   : > { %v577_v12 = vsel %vm494_vm13, %v576_v1, %v575_v63  ;;  %v373_v56 = vsel %vm285_vm8, 0, %v371_v33 }
  0xf7   : > { %v580_v3 = vsel %vm493_vm14, %v1378_v16, %v577_v12  ;;  %v1106_v6 = vmin.u32 %v350_v0, %v348_v43  ;;  %v377_v59 = vadd.s32 3, %v373_v56  ;;  %v796_v46 = vand.u32 3, %v373_v56 }
  0xf8   : > { %1215 = vcosq.f32 %v580_v3 }
  0xf9   : > { %1217 = vsinq.f32 %v580_v3  ;;  %v352_v7 = vclz %v1106_v6  ;;  %v378_v44 = vand.u32 3, %v377_v59  ;;  %vm801_vm10 = vcmp.eq.s32.totalorder %v796_v46, 2 }
  0xfa   : > { %vm798_vm12 = vcmp.eq.s32.totalorder %v796_v46, 0  ;;  %vm797_vm14 = vcmp.lt.s32.totalorder %v796_v46, 2 }
  0xfb   : > { %v1107_v11 = vadd.s32 4294967294, %v352_v7  ;;  %vm383_vm9 = vcmp.eq.s32.totalorder %v378_v44, 2  ;;  %vm380_vm11 = vcmp.eq.s32.totalorder %v378_v44, 0  ;;  %vm379_vm13 = vcmp.lt.s32.totalorder %v378_v44, 2 }
  0xfd   : > { %vm1108_vm15 = vcmp.lt.s32.totalorder %v1107_v11, 0 }
  0xfe   : > { %v355_v14 = vsel %vm1108_vm15, 0, %v1107_v11  ;;  %vm376_vm15 = vweird.f32 %v1454_v4 }
  0xff   : > { %v356_v35 = vsub.s32 32, %v355_v14  ;;  %v360_v38 = vsub.s32 4294967266, %v355_v14  ;;  %v357_v36 = vshll.u32 %v348_v43, %v355_v14 }
 0x101   : > { %v358_v19 = vshrl.u32 %v340_v18, %v356_v35  ;;  %v361_v29 = vadd.s32 127, %v360_v38 }
 0x103   : > { %v359_v34 = vor.u32 %v358_v19, %v357_v36  ;;  %v362_v39 = vshll.u32 %v361_v29, 23 }
 0x105   : > { %v1216_v32 = vpop.eup %1215  ;;  %v363_v21 = vor.u32 4788187, %v362_v39  ;;  %v366_v47 = vcvt.s32.f32 %v359_v34 }
 0x106   : > { %v1218_v24 = vpop.eup %1217  ;;  %v592_v2 = vxor.u32 2147483648, %v1216_v32 }
 0x107   : > { %v589_v53 = vxor.u32 2147483648, %v1218_v24  ;;  %v364_v8 = vand.u32 2147483647, %v363_v21 }
 0x108   : > { %v593_v41 = vsel %vm591_vm2, %v592_v2, %v1218_v24  ;;  %v1009_v25 = vsel %vm1007_vm1, %v592_v2, %v1218_v24 }
 0x109   : > { %v590_v26 = vsel %vm588_vm3, %v1216_v32, %v589_v53  ;;  %v1006_v27 = vsel %vm1004_vm4, %v1216_v32, %v589_v53  ;;  %v367_v28 = vmul.f32 %v366_v47, %v364_v8 }
 0x10a   : > { %v594_v31 = vsel %vm587_vm5, %v590_v26, %v593_v41  ;;  %v1010_v10 = vsel %vm1003_vm0, %v1006_v27, %v1009_v25 }
 0x10b   : > { %v595_v45 = vsel %vm584_vm6, nan, %v594_v31  ;;  %v1011_v20 = vsel %vm584_vm6, nan, %v1010_v10  ;;  %v368_v49 = vxor.u32 2147483648, %v367_v28 }
 0x10c   : > { %599 = vst [vmem:[%s1657_s30 + $0x30] sm:$0xff] %v595_v45  ;;  %1015 = vst [vmem:[%s1657_s30 + $0x38] sm:$0xff] %v1011_v20 }
 0x10d   : > { %v369_v42 = vsel %vm286_vm7, %v368_v49, %v367_v28 }
 0x10e   : > { %v372_v16 = vsel %vm285_vm8, %v1454_v4, %v369_v42 }
 0x10f   : > { %1219 = vcosq.f32 %v372_v16 }
 0x110   : > { %1221 = vsinq.f32 %v372_v16 }
 0x11c   : > { %v1220_v55 = vpop.eup %1219 }
 0x11d   : > { %v1222_v22 = vpop.eup %1221  ;;  %v384_v48 = vxor.u32 2147483648, %v1220_v55 }
 0x11e   : > { %v381_v51 = vxor.u32 2147483648, %v1222_v22 }
 0x11f   : > { %v385_v30 = vsel %vm383_vm9, %v384_v48, %v1222_v22  ;;  %v803_v40 = vsel %vm801_vm10, %v384_v48, %v1222_v22 }
 0x120   : > { %v382_v52 = vsel %vm380_vm11, %v1220_v55, %v381_v51  ;;  %v800_v54 = vsel %vm798_vm12, %v1220_v55, %v381_v51 }
 0x121   : > { %v386_v57 = vsel %vm379_vm13, %v382_v52, %v385_v30  ;;  %v804_v58 = vsel %vm797_vm14, %v800_v54, %v803_v40 }
 0x122   : > { %v387_v60 = vsel %vm376_vm15, nan, %v386_v57  ;;  %v805_v61 = vsel %vm376_vm15, nan, %v804_v58 }
 0x123   : > { %597 = vst [vmem:[%s1657_s30 + $0x10] sm:$0xff] %v387_v60  ;;  %1013 = vst [vmem:[%s1657_s30 + $0x18] sm:$0xff] %v805_v61 }
 0x124   : > { %1236 = shalt.err (!%p1233_p3)
}
 0x125   : > { %s1237_s21 = scalar_lea.hbm %s1704_s7, 1024  ;;  %s1241_s24 = scalar_lea.hbm %s1755_s2, 2048 }
 0x126   : > { %p1238_p4 = scmp.ne.s32.totalorder %s1704_s7, %s1237_s21  ;;  %p1242_p9 = scmp.lt.s32.totalorder %s1704_s7, %s1755_s2 }
 0x127   : > { %p1243_p10 = scmp.lt.s32.totalorder %s1241_s24, %s1237_s21 }
 0x128   : > { %p1239_p7 = pnand %p1238_p4, %p1348_p5 }
 0x129   : > { %p1244_p11 = por %p1243_p10, %p1242_p9 }
 0x12a   : > { %p1240_p8 = pneg %p1239_p7 }
 0x12c   : > { %p1245_p12 = pnand %p1244_p11, %p1240_p8 }
 0x12e   : > { %1248 = shalt.err (!%p1245_p12)
}
 0x12f   : > { %s1293_s27 = smov 256   ;;  %s1294_s28 = smov 16  }
 0x130   : > { %1157 = dma.vmem_to_hbm [thread:$0]  (%p1348_p5), %s1706_s4, 1024, %s1704_s7, %s1713_s8, %s1293_s27, %s1293_s27, %s1294_s28  }
 0x131 PF: > { %p1163_p13 = scmp.ge.s32.totalorder %s1283_s12, 2  ;;  %s1046_s29 = sand.u32 1, %s1271_s9  }
 0x132   : > { %s1047_s30 = scalar_lea.sflag [#allocation3], %s1046_s29 }
 0x133   : > { %p1160_p0 = pnand %p1163_p13, %p1352_p6 }
 0x135   : > { %p1161_p1 = pneg %p1160_p0 }
 0x137   : > { %1266 = dma.done.wait (%p1161_p1), %s1047_s30, 1024  }
 0x138   : > { %1268 = vsyncadd (%p1161_p1), %s1047_s30, 4294966272  ;;  %p12_p2 = scmp.ge.s32.totalorder %s1335_s15, 4   ;;  %s1762_s9 = smov %s1275_s10 }
 0x139   : > { %s1763_s10 = smov %s1279_s11  ;;  %s1764_s11 = smov %s1346_s18 }
 0x13a   : > { %s1765_s12 = smov %s1335_s15  ;;  %14 = sbr.rel (!%p12_p2) target bundleno = 3 (0x3), region = 63 }
 0x13f   :  { %1052 = vsyncpa [#allocation3], 1 }
 0x140   :  { %1054 = vsyncpa [#allocation3 + $0x1], 1 }

</bundles_post_ra>
